<compile_context>
chip_gen: v7x
topology: tpu7x:2x2x1
jax: 0.10.0
libtpu: 0.0.40
codegen_flags: <defaults>
</compile_context>

<pallas_src>
import functools

import jax
import jax.numpy as jnp
from jax.experimental import pallas as pl
from jax.experimental.pallas import tpu as pltpu


def _round_up(x, n):
    return ((x + n - 1) // n) * n


def _num_tensorcores_per_chip():
    """Best-effort TC count per chip: 2 on v7x, 1 on v5e/v6e (and on anything
    we can't identify — splitting a serial grid is pure overhead, so default 1)."""
    try:
        kind = jax.devices()[0].device_kind.lower()
    except Exception:
        return 1
    if "v7" in kind or "tpu7" in kind:
        return 2
    return 1


def _choose_block_m(m, block_m, num_tc):
    """Pick the M tile.

    Single-TC chips (v5e/v6e): biggest tile that fits block_m (grid is a serial
    loop; small tiles only add ~0.35 us/step overhead and fall below the
    streaming-roofline knee).

    v7x (2 TCs): aim for 2 tiles per core so both cores are busy and each core
    still overlaps prefetch/writeback, but never shrink tiles below 512 rows
    unless the batch itself is too small — then fall back to one tile per core.
    """
    m8 = _round_up(max(m, 1), 8)
    bm = max(8, min(block_m, m8))
    if num_tc >= 2 and m8 > 8:
        per_step = max(8, _round_up(pl.cdiv(m8, 2 * num_tc), 8))
        if per_step < 512:
            per_step = max(8, _round_up(pl.cdiv(m8, num_tc), 8))
        bm = max(8, min(bm, per_step))
    return bm


def _choose_in_width(feat_width, input_size):
    """Width of the y tile we DMA. Full width when y is narrow (last block dim
    == full array dim -> layout-legal); otherwise the smallest multiple of 128
    covering input_size, so wide feature tensors don't waste HBM bandwidth on
    columns the model never reads."""
    if feat_width <= 128:
        return feat_width
    return min(feat_width, _round_up(input_size, 128))


def _ffnn_kernel(y_ref, w0_ref, b0_ref, w1_ref, b1_ref, w2_ref, b2_ref, o_ref,
                 *, use_bf16_matmul):
    # y_ref: (bm, in_width) tile. w0 is row-zero-padded to in_width, so the y
    # columns beyond input_size contribute exactly zero — identical to the
    # reference's y[:, :input_size] slice (assuming those columns are finite),
    # without a lane-window slice / relayout of the LHS before the MXU.
    x = y_ref[...]
    w0 = w0_ref[...]
    w1 = w1_ref[...]
    w2 = w2_ref[...]
    if use_bf16_matmul:
        x, w0, w1, w2 = (t.astype(jnp.bfloat16) for t in (x, w0, w1, w2))

    # layer_0 + tanh  (tanh sits on the EUP slot; overlaps the MXU for free)
    h = jnp.dot(x, w0, preferred_element_type=jnp.float32) + b0_ref[...]
    h = jnp.tanh(h)

    # layer_1 + relu
    if use_bf16_matmul:
        h = h.astype(jnp.bfloat16)
    h = jnp.dot(h, w1, preferred_element_type=jnp.float32) + b1_ref[...]
    h = jnp.maximum(h, 0.0)

    # layer_2 + identity  (output block last dim == full out_dim -> direct store,
    # no lane padding, no wrapper-side slice pass)
    if use_bf16_matmul:
        h = h.astype(jnp.bfloat16)
    h = jnp.dot(h, w2, preferred_element_type=jnp.float32) + b2_ref[...]

    o_ref[...] = h.astype(o_ref.dtype)


@functools.partial(jax.jit, static_argnames=("block_m", "num_tc", "use_bf16_matmul"))
def ffnn_forward_step(y, params, block_m=1024, num_tc=1, use_bf16_matmul=False):
    """One fused pass of the Linear->activation stack."""
    (w0, b0), (w1, b1), (w2, b2) = params
    m, f = y.shape
    in_width = w0.shape[0]        # DMA'd y width; w0 already row-padded to it
    out_dim = w2.shape[1]
    assert in_width == f or (in_width < f and in_width % 128 == 0)

    bm = _choose_block_m(m, block_m, num_tc)
    grid = (pl.cdiv(m, bm),)

    # Weights / biases: full-array blocks with a constant index_map -> the
    # pipeline keeps one resident copy and never re-DMAs them across the grid.
    full = lambda i: (0, 0)

    return pl.pallas_call(
        functools.partial(_ffnn_kernel, use_bf16_matmul=use_bf16_matmul),
        out_shape=jax.ShapeDtypeStruct((m, out_dim), jnp.float32),
        grid_spec=pltpu.PrefetchScalarGridSpec(
            num_scalar_prefetch=0,
            grid=grid,
            in_specs=[
                # Either the full feature width (last block dim == array dim) or
                # a multiple-of-128 column window starting at column block 0.
                pl.BlockSpec((bm, in_width), lambda i: (i, 0)),
                pl.BlockSpec(w0.shape, full),
                pl.BlockSpec(b0.shape, full),
                pl.BlockSpec(w1.shape, full),
                pl.BlockSpec(b1.shape, full),
                pl.BlockSpec(w2.shape, full),
                pl.BlockSpec(b2.shape, full),
            ],
            # Real (m, out_dim) output: block last dim == full array dim -> legal,
            # and no padded lanes / no follow-up slice pass in XLA.
            out_specs=pl.BlockSpec((bm, out_dim), lambda i: (i, 0)),
        ),
        compiler_params=pltpu.CompilerParams(
            # Single batch axis, independent rows -> megacore-shardable on v7x.
            dimension_semantics=("parallel",),
            # VMEM at bm=2048: ~(2048*(in_width + out_dim))*4B*2buf ≈ a few MiB;
            # well under every generation's scoped default — no limit override.
        ),
    )(y, w0, b0, w1, b1, w2, b2)


def prepare_params(params, feat_width, input_size):
    """Zero-pad layer_0's weight rows from input_size up to the y width the
    kernel DMAs, so the matmul consumes the full (bm, in_width) tile with no
    in-VMEM column slice. Done once, outside jit."""
    (w0, b0), *rest = params
    in_width = _choose_in_width(feat_width, input_size)
    if in_width > w0.shape[0]:
        w0 = jnp.pad(w0, ((0, in_width - w0.shape[0]), (0, 0)))
    return ((w0, b0),) + tuple(rest)


def ffnn_forward(y, params, input_size, horizon=(1,), block_m=1024,
                 use_bf16_matmul=False):
    """Mirrors FFNN.forward. The visible reference has no feedback of x into y
    across horizon steps, so every step computes the identical value; we run
    the fused stack once instead of relaunching the kernel per step."""
    assert params[0][0].shape[0] == input_size
    del horizon  # result is horizon-invariant under the visible reference semantics
    padded_params = prepare_params(params, y.shape[1], input_size)
    return ffnn_forward_step(
        y, padded_params,
        block_m=block_m,
        num_tc=_num_tensorcores_per_chip(),
        use_bf16_matmul=use_bf16_matmul,
    )


def init_params(key, input_size, layer_sizes):
    """Deterministic nn.Linear-style init: U(-1/sqrt(fan_in), 1/sqrt(fan_in)).

    Returns weights already transposed to (in, out) and biases as (1, out).
    """
    sizes = [input_size] + list(layer_sizes)
    params = []
    for i in range(len(layer_sizes)):
        fan_in, fan_out = sizes[i], sizes[i + 1]
        key, kw, kb = jax.random.split(key, 3)
        bound = 1.0 / jnp.sqrt(fan_in)
        w = jax.random.uniform(kw, (fan_in, fan_out), jnp.float32, -bound, bound)
        b = jax.random.uniform(kb, (1, fan_out), jnp.float32, -bound, bound)
        params.append((w, b))
    return params


def _reference_forward(y, params, input_size):
    """Plain-JAX reference for correctness checking."""
    x = y[:, :input_size]
    (w0, b0), (w1, b1), (w2, b2) = params
    h = jnp.tanh(x @ w0 + b0)
    h = jnp.maximum(h @ w1 + b1, 0.0)
    return h @ w2 + b2


if __name__ == "__main__":
    input_size = 32
    layer_sizes = [64, 64, 16]
    batch = 16       # on v7x this still splits into 2 tiles (one per TensorCore)
    extra_feats = 8  # y has more columns than input_size; zero w0 rows drop them

    key = jax.random.PRNGKey(0)
    key, kx = jax.random.split(key)
    y = jax.random.normal(kx, (batch, input_size + extra_feats), jnp.float32)

    params = init_params(key, input_size, layer_sizes)

    out = ffnn_forward(y, params, input_size, horizon=(1,))
    out = jax.block_until_ready(out)

    ref = _reference_forward(y, params, input_size)
    assert out.shape == (batch, layer_sizes[-1])
    assert jnp.allclose(out, ref, atol=1e-5, rtol=1e-5), "mismatch vs JAX reference"

    print("KERNEL_OK")
</pallas_src>

<mosaic_0001>
module attributes {stable_mosaic.version = 11 : i64} {
  func.func @_ffnn_kernel(%arg0: i32, %arg1: memref<16x40xf32, #tpu.memory_space<vmem>>, %arg2: memref<40x64xf32, #tpu.memory_space<vmem>>, %arg3: memref<1x64xf32, #tpu.memory_space<vmem>>, %arg4: memref<64x64xf32, #tpu.memory_space<vmem>>, %arg5: memref<1x64xf32, #tpu.memory_space<vmem>>, %arg6: memref<64x16xf32, #tpu.memory_space<vmem>>, %arg7: memref<1x16xf32, #tpu.memory_space<vmem>>, %arg8: memref<16x16xf32, #tpu.memory_space<vmem>>) attributes {dimension_semantics = [#tpu.dimension_semantics<parallel>], iteration_bounds = array<i64: 1>, scalar_prefetch = 0 : i64, scratch_operands = 0 : i64, tpu.core_type = #tpu.core_type<tc>, window_params = [{transform_indices = @transform_0, window_bounds = array<i64: 16, 40>}, {pipeline_mode = #tpu.pipeline_mode<synchronous>, transform_indices = @transform_1, window_bounds = array<i64: 40, 64>}, {pipeline_mode = #tpu.pipeline_mode<synchronous>, transform_indices = @transform_2, window_bounds = array<i64: 1, 64>}, {pipeline_mode = #tpu.pipeline_mode<synchronous>, transform_indices = @transform_3, window_bounds = array<i64: 64, 64>}, {pipeline_mode = #tpu.pipeline_mode<synchronous>, transform_indices = @transform_4, window_bounds = array<i64: 1, 64>}, {pipeline_mode = #tpu.pipeline_mode<synchronous>, transform_indices = @transform_5, window_bounds = array<i64: 64, 16>}, {pipeline_mode = #tpu.pipeline_mode<synchronous>, transform_indices = @transform_6, window_bounds = array<i64: 1, 16>}, {transform_indices = @transform_7, window_bounds = array<i64: 16, 16>}]} {
    %c0 = arith.constant 0 : index
    %c0_0 = arith.constant 0 : index
    %0 = vector.load %arg1[%c0, %c0_0] : memref<16x40xf32, #tpu.memory_space<vmem>>, vector<16x40xf32>
    %c0_1 = arith.constant 0 : index
    %c0_2 = arith.constant 0 : index
    %1 = vector.load %arg2[%c0_1, %c0_2] : memref<40x64xf32, #tpu.memory_space<vmem>>, vector<40x64xf32>
    %c0_3 = arith.constant 0 : index
    %c0_4 = arith.constant 0 : index
    %2 = vector.load %arg4[%c0_3, %c0_4] : memref<64x64xf32, #tpu.memory_space<vmem>>, vector<64x64xf32>
    %c0_5 = arith.constant 0 : index
    %c0_6 = arith.constant 0 : index
    %3 = vector.load %arg6[%c0_5, %c0_6] : memref<64x16xf32, #tpu.memory_space<vmem>>, vector<64x16xf32>
    %cst = arith.constant dense<0.000000e+00> : vector<16x64xf32>
    %4 = tpu.matmul %0, %1, %cst {dimension_numbers = #tpu.dot_dimension_numbers<[1], [0], [0], [1], [0, 0, 1, 1], [], []>} : vector<16x40xf32>, vector<40x64xf32>, vector<16x64xf32> -> vector<16x64xf32>
    %c0_7 = arith.constant 0 : index
    %c0_8 = arith.constant 0 : index
    %5 = vector.load %arg3[%c0_7, %c0_8] : memref<1x64xf32, #tpu.memory_space<vmem>>, vector<1x64xf32>
    %6 = vector.broadcast %5 : vector<1x64xf32> to vector<16x64xf32>
    %7 = arith.addf %4, %6 : vector<16x64xf32>
    %8 = math.tanh %7 : vector<16x64xf32>
    %cst_9 = arith.constant dense<0.000000e+00> : vector<16x64xf32>
    %9 = tpu.matmul %8, %2, %cst_9 {dimension_numbers = #tpu.dot_dimension_numbers<[1], [0], [0], [1], [0, 0, 1, 1], [], []>} : vector<16x64xf32>, vector<64x64xf32>, vector<16x64xf32> -> vector<16x64xf32>
    %c0_10 = arith.constant 0 : index
    %c0_11 = arith.constant 0 : index
    %10 = vector.load %arg5[%c0_10, %c0_11] : memref<1x64xf32, #tpu.memory_space<vmem>>, vector<1x64xf32>
    %11 = vector.broadcast %10 : vector<1x64xf32> to vector<16x64xf32>
    %12 = arith.addf %9, %11 : vector<16x64xf32>
    %cst_12 = arith.constant 0.000000e+00 : f32
    %13 = vector.broadcast %cst_12 : f32 to vector<16x64xf32>
    %14 = arith.maximumf %12, %13 : vector<16x64xf32>
    %cst_13 = arith.constant dense<0.000000e+00> : vector<16x16xf32>
    %15 = tpu.matmul %14, %3, %cst_13 {dimension_numbers = #tpu.dot_dimension_numbers<[1], [0], [0], [1], [0, 0, 1, 1], [], []>} : vector<16x64xf32>, vector<64x16xf32>, vector<16x16xf32> -> vector<16x16xf32>
    %c0_14 = arith.constant 0 : index
    %c0_15 = arith.constant 0 : index
    %16 = vector.load %arg7[%c0_14, %c0_15] : memref<1x16xf32, #tpu.memory_space<vmem>>, vector<1x16xf32>
    %17 = vector.broadcast %16 : vector<1x16xf32> to vector<16x16xf32>
    %18 = arith.addf %15, %17 : vector<16x16xf32>
    %c0_16 = arith.constant 0 : index
    %c0_17 = arith.constant 0 : index
    %19 = vector.load %arg8[%c0_16, %c0_17] : memref<16x16xf32, #tpu.memory_space<vmem>>, vector<16x16xf32>
    tpu.vector_store %arg8[%c0_16, %c0_17], %18 {strides = array<i32>} : memref<16x16xf32, #tpu.memory_space<vmem>>, vector<16x16xf32>,
    return
  }
  func.func @transform_0(%arg0: i32) -> (i32, i32) {
    %c0_i32 = arith.constant 0 : i32
    %c0_i32_0 = arith.constant 0 : i32
    return %arg0, %c0_i32 : i32, i32
  }
  func.func @transform_1(%arg0: i32) -> (i32, i32) {
    %c0_i32 = arith.constant 0 : i32
    %c0_i32_0 = arith.constant 0 : i32
    %c0_i32_1 = arith.constant 0 : i32
    return %c0_i32, %c0_i32_0 : i32, i32
  }
  func.func @transform_2(%arg0: i32) -> (i32, i32) {
    %c0_i32 = arith.constant 0 : i32
    %c0_i32_0 = arith.constant 0 : i32
    %c0_i32_1 = arith.constant 0 : i32
    return %c0_i32, %c0_i32_0 : i32, i32
  }
  func.func @transform_3(%arg0: i32) -> (i32, i32) {
    %c0_i32 = arith.constant 0 : i32
    %c0_i32_0 = arith.constant 0 : i32
    %c0_i32_1 = arith.constant 0 : i32
    return %c0_i32, %c0_i32_0 : i32, i32
  }
  func.func @transform_4(%arg0: i32) -> (i32, i32) {
    %c0_i32 = arith.constant 0 : i32
    %c0_i32_0 = arith.constant 0 : i32
    %c0_i32_1 = arith.constant 0 : i32
    return %c0_i32, %c0_i32_0 : i32, i32
  }
  func.func @transform_5(%arg0: i32) -> (i32, i32) {
    %c0_i32 = arith.constant 0 : i32
    %c0_i32_0 = arith.constant 0 : i32
    %c0_i32_1 = arith.constant 0 : i32
    return %c0_i32, %c0_i32_0 : i32, i32
  }
  func.func @transform_6(%arg0: i32) -> (i32, i32) {
    %c0_i32 = arith.constant 0 : i32
    %c0_i32_0 = arith.constant 0 : i32
    %c0_i32_1 = arith.constant 0 : i32
    return %c0_i32, %c0_i32_0 : i32, i32
  }
  func.func @transform_7(%arg0: i32) -> (i32, i32) {
    %c0_i32 = arith.constant 0 : i32
    %c0_i32_0 = arith.constant 0 : i32
    return %arg0, %c0_i32 : i32, i32
  }
}

</mosaic_0001>

<bundles_post_ra>
// kernel: ffnn_forward_step.1
= control target key start
LH: loop header
LB: loop body
LE: loop exit
PB: predicated region body
PF: predicated region fallthrough
CT: control target
= control target key end

     0   :  { %12 = vsyncpa [#allocation3], 0  ;;  %s680_s0 = inlined_call_operand.vmem [shape: f32[16,40], index: 0, kind: input, shape index: {}]   ;;  %s681_s1 = inlined_call_operand.hbm [shape: f32[40,64], index: 1, kind: input, shape index: {}]   ;;  %s682_s2 = inlined_call_operand.vmem [shape: f32[1,64], index: 2, kind: input, shape index: {}]   ;;  %s683_s3 = inlined_call_operand.vmem [shape: f32[64,64], index: 3, kind: input, shape index: {}]   ;;  %s684_s4 = inlined_call_operand.vmem [shape: f32[1,64], index: 4, kind: input, shape index: {}]   ;;  %s685_s5 = inlined_call_operand.vmem [shape: f32[64,16], index: 5, kind: input, shape index: {}]   ;;  %s686_s6 = inlined_call_operand.vmem [shape: f32[1,16], index: 6, kind: input, shape index: {}]   ;;  %s687_s7 = inlined_call_operand.hbm [shape: f32[16,16], index: 7, kind: output, shape index: {}]  }
   0x1   :  { %13 = vsyncpa [#allocation4], 0  ;;  %s537_s24 = smov [#allocation2]   ;;  %s489_s28 = scalar_lea.hbm %s681_s1, 640 }
   0x2   :  { %s21_s25 = sshll.u32 %s537_s24, 4  ;;  %p490_p0 = scmp.ne.s32.totalorder %s681_s1, %s489_s28  ;;  %s22_s25 = int_to_ptr.vmem [resolvable:$true] %s21_s25 }
   0x3   :  { %p493_p1 = scmp.lt.u32.totalorder %s489_s28, %s681_s1 }
   0x5   :  { %p495_p2 = pnand %p493_p1, %p490_p0 }
   0x7   :  { %498 = shalt.err (!%p495_p2)
}
   0x8   :  { %s499_s10 = scalar_lea.vmem %s22_s25, 640  ;;  %p504_p4 = scmp.lt.s32.totalorder %s22_s25, %s22_s25 }
   0x9   :  { %p500_p3 = scmp.ne.s32.totalorder %s22_s25, %s499_s10  ;;  %p505_p5 = scmp.lt.s32.totalorder %s499_s10, %s499_s10 }
   0xb   :  { %p506_p6 = por %p505_p5, %p504_p4 }
   0xd   :  { %p507_p7 = pnand %p506_p6, %p500_p3 }
   0xf   :  { %510 = shalt.err (!%p507_p7)
}
  0x10   :  { %s538_s11 = smov 128   ;;  %s539_s12 = smov 8  }
  0x11   :  { %27 = dma.hbm_to_vmem [thread:$0]  %s681_s1, 640, %s22_s25, [#allocation3], %s538_s11, %s538_s11, %s539_s12  }
  0x12   :  { %533 = dma.done.wait [#allocation3], 640  }
  0x13   :  { %534 = vsyncadd [#allocation3], 4294966656  ;;  %vm71_vm0 = vcmask 326656   ;;  %v43_v0 = vld [vmem:[#allocation2] sm:$0xff]  ;;  %v44_v1 = vld [vmem:[#allocation2 + $0x8] sm:$0xff]  ;;  %vm162_vm1 = vcmask 523264  }
  0x14   :  { %v45_v2 = vld [vmem:[#allocation2 + $0x10] sm:$0xff]  ;;  %v441_v3 = vpack.c.bf16 %v44_v1, %v43_v0  ;;  %v46_v4 = vld [vmem:[#allocation2 + $0x18] sm:$0xff]  ;;  %v41_v5 = vld [vmem:[%s680_s0] sm:$0xff]  ;;  %vm334_vm2 = vcmask 130048  }
  0x15   :  { %v445_v6 = vpack.c.bf16 %v46_v4, %v45_v2  ;;  %400 = vmatprep.mubr.msk.f32.mxu0 %vm71_vm0, %v41_v5  ;;  %v47_v7 = vld [vmem:[#allocation2 + $0x20] sm:$0xff]  ;;  %v42_v8 = vld [vmem:[%s680_s0 + $0x8] sm:$0xff]  ;;  %v50_v12 = vld [vmem:[%s683_s3 + $0x10] sm:$0xff] }
  0x16   :  { %442 = vmatprep.subr.bf16.mxu0 %v441_v3  ;;  %v48_v9 = vld [vmem:[%s683_s3] sm:$0xff]  ;;  %v49_v10 = vld [vmem:[%s683_s3 + $0x8] sm:$0xff]  ;;  %v51_v13 = vld [vmem:[%s683_s3 + $0x18] sm:$0xff] }
  0x17   :  { %444 = vmatpush3.bf16.msra.mxu0 %v441_v3  ;;  %v449_v11 = vpack.c.bf16 %v49_v10, %v48_v9  ;;  %v453_v14 = vpack.c.bf16 %v51_v13, %v50_v12  ;;  %v52_v15 = vld [vmem:[%s683_s3 + $0x20] sm:$0xff]  ;;  %v53_v16 = vld [vmem:[%s683_s3 + $0x28] sm:$0xff]  ;;  %v54_v17 = vld [vmem:[%s683_s3 + $0x30] sm:$0xff] }
  0x18   :  { %446 = vmatprep.subr.bf16.mxu0 %v445_v6  ;;  %v457_v18 = vpack.c.bf16 %v53_v16, %v52_v15  ;;  %v55_v19 = vld [vmem:[%s683_s3 + $0x38] sm:$0xff]  ;;  %v56_v21 = vld [vmem:[%s685_s5] sm:$0xff]  ;;  %v57_v22 = vld [vmem:[%s685_s5 + $0x8] sm:$0xff] }
  0x19   :  { %450 = vmatprep.subr.bf16.mxu1 %v449_v11  ;;  %v461_v20 = vpack.c.bf16 %v55_v19, %v54_v17  ;;  %v58_v23 = vld [vmem:[%s685_s5 + $0x10] sm:$0xff]  ;;  %v465_v24 = vpack.c.bf16 %v57_v22, %v56_v21  ;;  %v59_v25 = vld [vmem:[%s685_s5 + $0x18] sm:$0xff]  ;;  %v60_v27 = vld [vmem:[%s685_s5 + $0x20] sm:$0xff] }
  0x1a   :  { %452 = vmatpush3.bf16.msra.mxu1 %v449_v11  ;;  %v469_v26 = vpack.c.bf16 %v59_v25, %v58_v23  ;;  %v61_v28 = vld [vmem:[%s685_s5 + $0x28] sm:$0xff]  ;;  %v354_v30 = vld [vmem:[%s682_s2] ss:$0 sm:$0xff]  ;;  %v62_v37 = vld [vmem:[%s685_s5 + $0x30] sm:$0xff] }
  0x1b   :  { %448 = vmatpush3.bf16.msra.mxu0 %v445_v6  ;;  %454 = vmatprep.subr.bf16.mxu1 %v453_v14  ;;  %v473_v29 = vpack.c.bf16 %v61_v28, %v60_v27  ;;  %v63_v38 = vld [vmem:[%s685_s5 + $0x38] sm:$0xff]  ;;  %v357_v40 = vld [vmem:[%s684_s4] ss:$0 sm:$0xff]  ;;  %s540_s5 = smov [#allocation5]  }
  0x1c   :  { %398 = vmatprep.subr.mxu0 %v47_v7  ;;  %v477_v39 = vpack.c.bf16 %v63_v38, %v62_v37  ;;  %v360_v47 = vld [vmem:[%s686_s6] ss:$0 sm:$0xff]  ;;  %s342_s30 = sshll.u32 %s540_s5, 4  ;;  %s343_s30 = int_to_ptr.vmem [resolvable:$true] %s342_s30 }
  0x1d   :  { %s511_s4 = scalar_lea.vmem %s343_s30, 256  ;;  %p516_p9 = scmp.lt.s32.totalorder %s343_s30, %s343_s30 }
  0x1e   :  { %456 = vmatpush3.bf16.msra.mxu1 %v453_v14  ;;  %p512_p8 = scmp.ne.s32.totalorder %s343_s30, %s511_s4  ;;  %p517_p10 = scmp.lt.s32.totalorder %s511_s4, %s511_s4 }
  0x1f   :  { %399 = vmatpush3.msra.mxu0 %v47_v7  ;;  %458 = vmatprep.subr.bf16.mxu1 %v457_v18 }
  0x20   :  { %401 = vmatmul.mubr.msk.f32.vlgmr.msra.gmra.mrb[0].mxu0 %vm71_vm0, %v42_v8  ;;  %466 = vmatprep.subr.bf16.mxu0 %v465_v24  ;;  %p518_p11 = por %p517_p10, %p516_p9 }
  0x21   :  { %468 = vmatpush3.bf16.msra.mxu0 %v465_v24 }
  0x22   :  { %460 = vmatpush3.bf16.msra.mxu1 %v457_v18  ;;  %470 = vmatprep.subr.bf16.mxu0 %v469_v26  ;;  %p519_p12 = pnand %p518_p11, %p512_p8 }
  0x23   :  { %462 = vmatprep.subr.bf16.mxu1 %v461_v20 }
  0x25   :  { %472 = vmatpush3.bf16.msra.mxu0 %v469_v26 }
  0x26   :  { %464 = vmatpush3.bf16.msra.mxu1 %v461_v20  ;;  %474 = vmatprep.subr.bf16.mxu0 %v473_v29 }
  0x29   :  { %476 = vmatpush3.bf16.msra.mxu0 %v473_v29 }
  0x2a   :  { %478 = vmatprep.subr.bf16.mxu0 %v477_v39 }
  0x2d   :  { %480 = vmatpush3.bf16.msra.mxu0 %v477_v39 }
  0xf3   :  { %v402_v31 = vpop.f32.mrb[0].mxu0 }
  0xf4   :  { %v150_v32 = vadd.f32 %v402_v31, %v354_v30  ;;  %v144_v33 = vpop.f32.mrb[1].mxu0 }
  0xf5   :  { %v145_v34 = vadd.f32 %v354_v30, %v144_v33 }
  0xf7   :  { %485 = vtanh.f32 %v145_v34 }
  0xf8   :  { %487 = vtanh.f32 %v150_v32 }
 0x101   :  { %v486_v35 = vpop.eup %485 }
 0x102   :  { %v488_v36 = vpop.eup %487  ;;  %419 = vmatprep.mubr.msk.f32.mxu1 %vm162_vm1, %v486_v35 }
 0x103   :  { %420 = vmatmul.mubr.msk.f32.vlgmr.msra.gmra.mrb[0].mxu1 %vm162_vm1, %v488_v36 }
 0x1d6   :  { %v421_v41 = vpop.f32.mrb[0].mxu1 }
 0x1d7   :  { %v241_v42 = vadd.f32 %v421_v41, %v357_v40  ;;  %v235_v43 = vpop.f32.mrb[1].mxu1 }
 0x1d8   :  { %v236_v44 = vadd.f32 %v357_v40, %v235_v43 }
 0x1d9   :  { %v245_v46 = vmax.f32 %v241_v42, 0.0 }
 0x1da   :  { %v244_v45 = vmax.f32 %v236_v44, 0.0 }
 0x1dc   :  { %438 = vmatprep.mubr.msk.f32.mxu0 %vm162_vm1, %v244_v45 }
 0x1dd   :  { %439 = vmatmul.mubr.msk.f32.vlgmr.msra.gmra.mrb[2].mxu0 %vm162_vm1, %v245_v46 }
 0x2b0   :  { %v440_v48 = vpop.f32.mrb[2].mxu0 }
 0x2b1   :  { %v331_v49 = vadd.f32 %v440_v48, %v360_v47  ;;  %v325_v50 = vpop.f32.mrb[3].mxu0 }
 0x2b2   :  { %v326_v51 = vadd.f32 %v360_v47, %v325_v50 }
 0x2b3   :  { %336 = vst.msk [vmem:[#allocation5 + $0x8] sm:$0xff] %vm334_vm2, %v331_v49 }
 0x2b4   :  { %335 = vst.msk [vmem:[#allocation5] sm:$0xff] %vm334_vm2, %v326_v51 }
 0x2b5   :  { %522 = shalt.err (!%p519_p12)
}
 0x2b6   :  { %s523_s6 = scalar_lea.hbm %s687_s7, 256 }
 0x2b7   :  { %p524_p13 = scmp.ne.s32.totalorder %s687_s7, %s523_s6  ;;  %p527_p0 = scmp.lt.u32.totalorder %s523_s6, %s687_s7 }
 0x2b9   :  { %p529_p1 = pnand %p527_p0, %p524_p13 }
 0x2bb   :  { %532 = shalt.err (!%p529_p1)
}
 0x2bc   :  { %348 = dma.vmem_to_hbm [thread:$0]  %s343_s30, 256, %s687_s7, [#allocation4], %s538_s11, %s538_s11, %s539_s12  }
 0x2bd   :  { %535 = dma.done.wait [#allocation4], 256  }
 0x2be   :  { %536 = vsyncadd [#allocation4], 4294967040 }
 0x2bf   :  { %352 = vsyncpa [#allocation3], 1 }
 0x2c0   :  { %353 = vsyncpa [#allocation4], 1 }

</bundles_post_ra>
